<compile_context>
chip_gen: v7x
topology: tpu7x:2x2x1
jax: 0.10.0
libtpu: 0.0.40
codegen_flags: <defaults>
</compile_context>

<pallas_src>
import jax
import jax.numpy as jnp
from jax.experimental import pallas as pl
from jax.experimental.pallas import tpu as pltpu

# ---------------- model hyper-parameters (small, consistent with the module) --
B = 2                     # batch
S = 8                     # sequence length
H = 32                    # hidden_size
HD = 16                   # attention_head_size
NH = 2                    # num_attention_heads
QKV = HD * NH             # qkv_size = 32
MLP = 64                  # mlp_size
ROPE_FRACTION = 2
RD = HD // ROPE_FRACTION  # rotary dims per head = 8
ROPE_BASE = 10000.0
EPS = 1e-5
SCALE = 1.0 / (HD ** 0.5)
UP_OUT = 3 * QKV + 2 * MLP        # original fused up width = 224
DOWN_IN = QKV + MLP               # fused down-projection input width = 96
BS = B * S

# --- fused up-projection column layout:  [gate | val | q | q_rot | k | k_rot | v]
GATE_OFF = 0
VAL_OFF = MLP
Q_OFF = 2 * MLP                   # 128
QR_OFF = Q_OFF + QKV              # 160
K_OFF = QR_OFF + QKV              # 192
KR_OFF = K_OFF + QKV              # 224
V_OFF = KR_OFF + QKV              # 256
UPW = V_OFF + QKV                 # 288

# --- activation slab layout (per call): x | block-diag mask (+register column)
SLAB_W = 64
MASK_OFF = 32                     # mask occupies lanes 32 .. 32+BS (17 wide)

# --- const slab layout (computed once in prepare_params)
LNW_ROW = DOWN_IN                 # 96
LNB_ROW = DOWN_IN + 1
FILT_ROW = DOWN_IN + 2
RK_ROW = DOWN_IN + 3
RV_ROW = DOWN_IN + 4
COS_ROW = 104                     # 8-sublane aligned
SIN_ROW = COS_ROW + BS            # 120
CROWS = SIN_ROW + BS              # 136


# ------------------------------- the kernel ----------------------------------
def decoder_layer_kernel(slab_ref, w_up_ref, cvec_ref, o_ref):
    slab = slab_ref[...]                                # (BS, SLAB_W)
    x = slab[:, 0:H]                                    # (BS, 32)
    mask = slab[:, MASK_OFF:MASK_OFF + BS + 1]          # (BS, BS+1) additive

    cvec = cvec_ref[...]                                # (CROWS, 32)
    w_down = cvec[0:DOWN_IN, :]                         # (96, 32)
    ln_w = cvec[LNW_ROW:LNW_ROW + 1, :]
    ln_b = cvec[LNB_ROW:LNB_ROW + 1, :]
    filt = cvec[FILT_ROW:FILT_ROW + 1, :]
    r_k = cvec[RK_ROW:RK_ROW + 1, :]
    r_v = cvec[RV_ROW:RV_ROW + 1, :]
    cos_q = cvec[COS_ROW:COS_ROW + BS, :]               # (BS, 32)  per-head [cos, 1]
    sin_q = cvec[SIN_ROW:SIN_ROW + BS, :]               # (BS, 32)  per-head [sin, 0]

    # ---- io.enter : LayerNorm ------------------------------------------------
    mu = jnp.mean(x, axis=-1, keepdims=True)
    var = jnp.mean((x - mu) ** 2, axis=-1, keepdims=True)
    xn = (x - mu) * jax.lax.rsqrt(var + EPS) * ln_w + ln_b

    # ---- up : ONE fused matmul (gate, val, q, q_rot, k, k_rot, v) -------------
    up = jnp.dot(xn, w_up_ref[...], preferred_element_type=jnp.float32)  # (BS, 288)

    gate = up[:, GATE_OFF:GATE_OFF + MLP]
    val = up[:, VAL_OFF:VAL_OFF + MLP]
    q = up[:, Q_OFF:Q_OFF + QKV]
    q_rot = up[:, QR_OFF:QR_OFF + QKV]
    k = up[:, K_OFF:K_OFF + QKV]
    k_rot = up[:, KR_OFF:KR_OFF + QKV]
    v = up[:, V_OFF:V_OFF + QKV]

    # ---- RoPE : baked rotate-half -> two full-width FMAs, no lane movement ----
    qr = q * cos_q + q_rot * sin_q                      # (BS, 32) both heads
    kr = k * cos_q + k_rot * sin_q

    # ---- mlp : silu-GLU --------------------------------------------------------
    mlp_out = gate * jax.nn.sigmoid(gate) * val         # (BS, MLP)

    # ---- attention : one matmul / softmax / matmul per head (block-diag mask) --
    heads = []
    for h in range(NH):                                  # static unroll, NH = 2
        sl = slice(h * HD, (h + 1) * HD)
        qh, kh, vh = qr[:, sl], kr[:, sl], v[:, sl]
        rk_h = r_k[:, sl]                                # (1, HD)
        rv_h = r_v[:, sl]                                # (1, HD)

        scores = jax.lax.dot_general(
            qh, kh, (((1,), (1,)), ((), ())),
            preferred_element_type=jnp.float32) * SCALE + mask[:, :BS]   # (BS, BS)
        # register-token score via lane reduction (register key is NOT rotated)
        sreg = jnp.sum(qh * rk_h, axis=-1, keepdims=True) * SCALE \
            + mask[:, BS:BS + 1]                                          # (BS, 1)

        m = jnp.maximum(jnp.max(scores, axis=-1, keepdims=True), sreg)
        e = jnp.exp(scores - m)                           # cross-batch cols -> exact 0
        ereg = jnp.exp(sreg - m)
        inv = pl.reciprocal(jnp.sum(e, axis=-1, keepdims=True) + ereg,
                            approx=True)                  # EUP path
        heads.append(jnp.dot(e * inv, vh, preferred_element_type=jnp.float32)
                     + (ereg * inv) * rv_h)               # (BS, HD)

    # ---- down : ONE fused (BS,96) x (96,H) matmul ------------------------------
    down_in = jnp.concatenate(heads + [mlp_out], axis=-1)                 # (BS, 96)
    y = jnp.dot(down_in, w_down, preferred_element_type=jnp.float32)      # (BS, H)

    # ---- io.exit : ReZero residual ----------------------------------------------
    o_ref[...] = x + filt * y


# --------------------------- wrapper + param packing ---------------------------
def prepare_params(params):
    """One-time repack of module parameters into kernel-friendly layout."""
    w_up = params["w_up"]                               # (H, 224): q,k,v,gate,val
    wq = w_up[:, :QKV]
    wk = w_up[:, QKV:2 * QKV]
    wv = w_up[:, 2 * QKV:3 * QKV]
    wg = w_up[:, 3 * QKV:3 * QKV + MLP]
    wval = w_up[:, 3 * QKV + MLP:]

    def rot_cols(w):
        # columns producing rotate_half of the rotary part; pass-through cols = 0
        wh = w.reshape(H, NH, HD)
        r = jnp.zeros_like(wh)
        r = r.at[:, :, :RD // 2].set(-wh[:, :, RD // 2:RD])
        r = r.at[:, :, RD // 2:RD].set(wh[:, :, :RD // 2])
        return r.reshape(H, QKV)

    w_up_fused = jnp.concatenate(
        [wg, wval, wq, rot_cols(wq), wk, rot_cols(wk), wv], axis=-1)      # (H, 288)

    # per-head padded cos/sin : [cos(RD), 1] / [sin(RD), 0], tiled over heads+batch
    cos_h = jnp.concatenate(
        [params["cos"], jnp.ones((S, HD - RD), jnp.float32)], axis=-1)    # (S, HD)
    sin_h = jnp.concatenate(
        [params["sin"], jnp.zeros((S, HD - RD), jnp.float32)], axis=-1)
    cos_q = jnp.tile(cos_h, (B, NH))                                      # (BS, QKV)
    sin_q = jnp.tile(sin_h, (B, NH))

    cvec = jnp.zeros((CROWS, H), jnp.float32)
    cvec = cvec.at[0:DOWN_IN, :].set(params["w_down"])
    cvec = cvec.at[LNW_ROW, :].set(params["ln_w"])
    cvec = cvec.at[LNB_ROW, :].set(params["ln_b"])
    cvec = cvec.at[FILT_ROW, :].set(params["filter"])
    cvec = cvec.at[RK_ROW, :].set(params["r_k"])
    cvec = cvec.at[RV_ROW, :].set(params["r_v"])
    cvec = cvec.at[COS_ROW:COS_ROW + BS, :].set(cos_q)
    cvec = cvec.at[SIN_ROW:SIN_ROW + BS, :].set(sin_q)

    return {"w_up": w_up_fused, "cvec": cvec}


@jax.jit
def hlm_decoder_layer(hidden_states, attn_mask, kp):
    x2 = hidden_states.reshape(BS, H)

    # block-diagonal additive mask (BS, BS+1): cross-batch blocks = -1e9,
    # register column (always visible) appended last.
    mask_b = jnp.broadcast_to(attn_mask, (B, 1, S, S + 1))[:, 0]          # (B,S,S+1)
    mask_sq = mask_b[:, :, :S]                                            # (B,S,S)
    mask_reg = mask_b[:, :, S:]                                           # (B,S,1)
    eye = jnp.eye(B, dtype=jnp.float32)[:, None, :, None]                 # (B,1,B,1)
    bd = eye * mask_sq[:, :, None, :] + (1.0 - eye) * (-1e9)              # (B,S,B,S)
    mask_bd = jnp.concatenate(
        [bd.reshape(BS, BS), mask_reg.reshape(BS, 1)], axis=-1)           # (BS,BS+1)

    # single activation slab: one DMA instead of four
    slab = jnp.zeros((BS, SLAB_W), jnp.float32)
    slab = slab.at[:, 0:H].set(x2)
    slab = slab.at[:, MASK_OFF:MASK_OFF + BS + 1].set(mask_bd)

    full2d = lambda i: (0, 0)
    out = pl.pallas_call(
        decoder_layer_kernel,
        out_shape=jax.ShapeDtypeStruct((BS, H), jnp.float32),
        grid=(1,),   # single invocation; do NOT split across cores at this size
        in_specs=[
            pl.BlockSpec((BS, SLAB_W), full2d),        # x + block-diag mask
            pl.BlockSpec((H, UPW), full2d),            # fused up weight (288 wide)
            pl.BlockSpec((CROWS, H), full2d),          # w_down + vectors + cos/sin
        ],
        out_specs=pl.BlockSpec((BS, H), full2d),
        compiler_params=pltpu.CompilerParams(dimension_semantics=("arbitrary",)),
    )(slab, kp["w_up"], kp["cvec"])
    return out.reshape(B, S, H)


# ---------------------------- pure-JAX reference ------------------------------
def _rope_ref(t, cos, sin):
    tr, tp = t[:, :RD], t[:, RD:]
    t1, t2 = tr[:, :RD // 2], tr[:, RD // 2:]
    rot = jnp.concatenate([-t2, t1], axis=-1)
    return jnp.concatenate([tr * cos + rot * sin, tp], axis=-1)


def reference(hidden_states, attn_mask, params):
    outs = []
    for b in range(B):
        x = hidden_states[b]
        mask = attn_mask[b, 0]
        mu = jnp.mean(x, axis=-1, keepdims=True)
        var = jnp.mean((x - mu) ** 2, axis=-1, keepdims=True)
        xn = (x - mu) * jax.lax.rsqrt(var + EPS) * params["ln_w"] + params["ln_b"]
        up = xn @ params["w_up"]
        q, k, v = up[:, :QKV], up[:, QKV:2 * QKV], up[:, 2 * QKV:3 * QKV]
        gate, val = up[:, 3 * QKV:3 * QKV + MLP], up[:, 3 * QKV + MLP:]
        heads = []
        for h in range(NH):
            qh = _rope_ref(q[:, h * HD:(h + 1) * HD], params["cos"], params["sin"])
            kh = _rope_ref(k[:, h * HD:(h + 1) * HD], params["cos"], params["sin"])
            vh = v[:, h * HD:(h + 1) * HD]
            kf = jnp.concatenate([kh, params["r_k"][h * HD:(h + 1) * HD][None]], 0)
            vf = jnp.concatenate([vh, params["r_v"][h * HD:(h + 1) * HD][None]], 0)
            s = qh @ kf.T * SCALE + mask
            p = jax.nn.softmax(s, axis=-1)
            heads.append(p @ vf)
        attn_out = jnp.concatenate(heads, axis=-1)
        mlp_out = jax.nn.silu(gate) * val
        y = jnp.concatenate([attn_out, mlp_out], axis=-1) @ params["w_down"]
        outs.append(x + params["filter"] * y)
    return jnp.stack(outs)


if __name__ == "__main__":
    key = jax.random.PRNGKey(0)
    ks = jax.random.split(key, 8)

    hidden_states = jax.random.normal(ks[0], (B, S, H), jnp.float32)

    # causal mask with an all-visible register column appended (get_attn_mask)
    causal = jnp.where(jnp.tril(jnp.ones((S, S), jnp.bool_)), 0.0, -1e9).astype(jnp.float32)
    attn_mask = jnp.concatenate([causal, jnp.zeros((S, 1), jnp.float32)], axis=-1)
    attn_mask = jnp.broadcast_to(attn_mask[None, None], (B, 1, S, S + 1))

    # RoPE tables (position_scale = 1.0)
    inv_freq = 1.0 / (ROPE_BASE ** (jnp.arange(0, RD, 2, dtype=jnp.float32) / RD))
    pos = jnp.arange(S, dtype=jnp.float32)
    freqs = pos[:, None] * inv_freq[None, :]           # (S, RD/2)
    emb = jnp.concatenate([freqs, freqs], axis=-1)     # (S, RD)

    params = {
        "cos": jnp.cos(emb),
        "sin": jnp.sin(emb),
        "ln_w": jnp.ones((H,), jnp.float32),
        "ln_b": jnp.zeros((H,), jnp.float32),
        # ReZero filter is zero-init in the module; use small nonzero values here so
        # the whole compute path is exercised (synthetic deterministic init).
        "filter": 0.1 * jax.random.normal(ks[1], (H,), jnp.float32),
        "w_up": 0.02 * jax.random.normal(ks[2], (H, UP_OUT), jnp.float32),
        "w_down": 0.02 * jax.random.normal(ks[3], (DOWN_IN, H), jnp.float32),
        "r_k": 0.02 * jax.random.normal(ks[4], (QKV,), jnp.float32),
        "r_v": 0.02 * jax.random.normal(ks[5], (QKV,), jnp.float32),
    }

    kparams = prepare_params(params)

    out = jax.block_until_ready(hlm_decoder_layer(hidden_states, attn_mask, kparams))
    ref = reference(hidden_states, attn_mask, params)

    assert out.shape == (B, S, H)
    assert jnp.allclose(out, ref, atol=1e-4, rtol=1e-4), "mismatch vs pure-JAX reference"
    print("KERNEL_OK")
</pallas_src>

<mosaic_0001>
module attributes {stable_mosaic.version = 11 : i64} {
  func.func @decoder_layer_kernel(%arg0: i32, %arg1: memref<16x64xf32, #tpu.memory_space<vmem>>, %arg2: memref<32x288xf32, #tpu.memory_space<vmem>>, %arg3: memref<136x32xf32, #tpu.memory_space<vmem>>, %arg4: memref<16x32xf32, #tpu.memory_space<vmem>>) attributes {dimension_semantics = [#tpu.dimension_semantics<arbitrary>], iteration_bounds = array<i64: 1>, scalar_prefetch = 0 : i64, scratch_operands = 0 : i64, tpu.core_type = #tpu.core_type<tc>, window_params = [{pipeline_mode = #tpu.pipeline_mode<synchronous>, transform_indices = @transform_0, window_bounds = array<i64: 16, 64>}, {pipeline_mode = #tpu.pipeline_mode<synchronous>, transform_indices = @transform_1, window_bounds = array<i64: 32, 288>}, {pipeline_mode = #tpu.pipeline_mode<synchronous>, transform_indices = @transform_2, window_bounds = array<i64: 136, 32>}, {pipeline_mode = #tpu.pipeline_mode<synchronous>, transform_indices = @transform_3, window_bounds = array<i64: 16, 32>}]} {
    %c0 = arith.constant 0 : index
    %c0_0 = arith.constant 0 : index
    %0 = vector.load %arg1[%c0, %c0_0] : memref<16x64xf32, #tpu.memory_space<vmem>>, vector<16x64xf32>
    %1 = vector.extract_strided_slice %0 {offsets = [0, 0], sizes = [16, 32], strides = [1, 1]} : vector<16x64xf32> to vector<16x32xf32>
    %2 = vector.extract_strided_slice %0 {offsets = [0, 32], sizes = [16, 17], strides = [1, 1]} : vector<16x64xf32> to vector<16x17xf32>
    %c0_1 = arith.constant 0 : index
    %c0_2 = arith.constant 0 : index
    %3 = vector.load %arg3[%c0_1, %c0_2] : memref<136x32xf32, #tpu.memory_space<vmem>>, vector<136x32xf32>
    %4 = vector.extract_strided_slice %3 {offsets = [0, 0], sizes = [96, 32], strides = [1, 1]} : vector<136x32xf32> to vector<96x32xf32>
    %5 = vector.extract_strided_slice %3 {offsets = [96, 0], sizes = [1, 32], strides = [1, 1]} : vector<136x32xf32> to vector<1x32xf32>
    %6 = vector.extract_strided_slice %3 {offsets = [97, 0], sizes = [1, 32], strides = [1, 1]} : vector<136x32xf32> to vector<1x32xf32>
    %7 = vector.extract_strided_slice %3 {offsets = [98, 0], sizes = [1, 32], strides = [1, 1]} : vector<136x32xf32> to vector<1x32xf32>
    %8 = vector.extract_strided_slice %3 {offsets = [99, 0], sizes = [1, 32], strides = [1, 1]} : vector<136x32xf32> to vector<1x32xf32>
    %9 = vector.extract_strided_slice %3 {offsets = [100, 0], sizes = [1, 32], strides = [1, 1]} : vector<136x32xf32> to vector<1x32xf32>
    %10 = vector.extract_strided_slice %3 {offsets = [104, 0], sizes = [16, 32], strides = [1, 1]} : vector<136x32xf32> to vector<16x32xf32>
    %11 = vector.extract_strided_slice %3 {offsets = [120, 0], sizes = [16, 32], strides = [1, 1]} : vector<136x32xf32> to vector<16x32xf32>
    %cst = arith.constant dense<0.000000e+00> : vector<16xf32>
    %12 = vector.multi_reduction <add>, %1, %cst [1] : vector<16x32xf32> to vector<16xf32>
    %13 = vector.shape_cast %12 : vector<16xf32> to vector<16x1xf32>
    %cst_3 = arith.constant 3.200000e+01 : f32
    %14 = vector.broadcast %cst_3 : f32 to vector<16x1xf32>
    %15 = arith.divf %13, %14 : vector<16x1xf32>
    %16 = vector.broadcast %15 : vector<16x1xf32> to vector<16x32xf32>
    %17 = arith.subf %1, %16 : vector<16x32xf32>
    %18 = arith.mulf %17, %17 : vector<16x32xf32>
    %cst_4 = arith.constant dense<0.000000e+00> : vector<16xf32>
    %19 = vector.multi_reduction <add>, %18, %cst_4 [1] : vector<16x32xf32> to vector<16xf32>
    %20 = vector.shape_cast %19 : vector<16xf32> to vector<16x1xf32>
    %cst_5 = arith.constant 3.200000e+01 : f32
    %21 = vector.broadcast %cst_5 : f32 to vector<16x1xf32>
    %22 = arith.divf %20, %21 : vector<16x1xf32>
    %23 = vector.broadcast %15 : vector<16x1xf32> to vector<16x32xf32>
    %24 = arith.subf %1, %23 : vector<16x32xf32>
    %cst_6 = arith.constant 9.99999974E-6 : f32
    %25 = vector.broadcast %cst_6 : f32 to vector<16x1xf32>
    %26 = arith.addf %22, %25 : vector<16x1xf32>
    %27 = math.rsqrt %26 : vector<16x1xf32>
    %28 = vector.broadcast %27 : vector<16x1xf32> to vector<16x32xf32>
    %29 = arith.mulf %24, %28 : vector<16x32xf32>
    %30 = vector.broadcast %5 : vector<1x32xf32> to vector<16x32xf32>
    %31 = arith.mulf %29, %30 : vector<16x32xf32>
    %32 = vector.broadcast %6 : vector<1x32xf32> to vector<16x32xf32>
    %33 = arith.addf %31, %32 : vector<16x32xf32>
    %c0_7 = arith.constant 0 : index
    %c0_8 = arith.constant 0 : index
    %34 = vector.load %arg2[%c0_7, %c0_8] : memref<32x288xf32, #tpu.memory_space<vmem>>, vector<32x288xf32>
    %cst_9 = arith.constant dense<0.000000e+00> : vector<16x288xf32>
    %35 = tpu.matmul %33, %34, %cst_9 {dimension_numbers = #tpu.dot_dimension_numbers<[1], [0], [0], [1], [0, 0, 1, 1], [], []>} : vector<16x32xf32>, vector<32x288xf32>, vector<16x288xf32> -> vector<16x288xf32>
    %36 = vector.extract_strided_slice %35 {offsets = [0, 0], sizes = [16, 64], strides = [1, 1]} : vector<16x288xf32> to vector<16x64xf32>
    %37 = vector.extract_strided_slice %35 {offsets = [0, 64], sizes = [16, 64], strides = [1, 1]} : vector<16x288xf32> to vector<16x64xf32>
    %38 = vector.extract_strided_slice %35 {offsets = [0, 128], sizes = [16, 32], strides = [1, 1]} : vector<16x288xf32> to vector<16x32xf32>
    %39 = vector.extract_strided_slice %35 {offsets = [0, 160], sizes = [16, 32], strides = [1, 1]} : vector<16x288xf32> to vector<16x32xf32>
    %40 = vector.extract_strided_slice %35 {offsets = [0, 192], sizes = [16, 32], strides = [1, 1]} : vector<16x288xf32> to vector<16x32xf32>
    %41 = vector.extract_strided_slice %35 {offsets = [0, 224], sizes = [16, 32], strides = [1, 1]} : vector<16x288xf32> to vector<16x32xf32>
    %42 = vector.extract_strided_slice %35 {offsets = [0, 256], sizes = [16, 32], strides = [1, 1]} : vector<16x288xf32> to vector<16x32xf32>
    %43 = arith.mulf %38, %10 : vector<16x32xf32>
    %44 = arith.mulf %39, %11 : vector<16x32xf32>
    %45 = arith.addf %43, %44 : vector<16x32xf32>
    %46 = arith.mulf %40, %10 : vector<16x32xf32>
    %47 = arith.mulf %41, %11 : vector<16x32xf32>
    %48 = arith.addf %46, %47 : vector<16x32xf32>
    %49 = arith.negf %36 : vector<16x64xf32>
    %50 = math.exp %49 : vector<16x64xf32>
    %cst_10 = arith.constant 1.000000e+00 : f32
    %51 = vector.broadcast %cst_10 : f32 to vector<16x64xf32>
    %52 = arith.addf %51, %50 : vector<16x64xf32>
    %53 = arith.divf %51, %52 : vector<16x64xf32>
    %54 = arith.mulf %36, %53 : vector<16x64xf32>
    %55 = arith.mulf %54, %37 : vector<16x64xf32>
    %56 = vector.extract_strided_slice %45 {offsets = [0, 0], sizes = [16, 16], strides = [1, 1]} : vector<16x32xf32> to vector<16x16xf32>
    %57 = vector.extract_strided_slice %48 {offsets = [0, 0], sizes = [16, 16], strides = [1, 1]} : vector<16x32xf32> to vector<16x16xf32>
    %58 = vector.extract_strided_slice %42 {offsets = [0, 0], sizes = [16, 16], strides = [1, 1]} : vector<16x32xf32> to vector<16x16xf32>
    %59 = vector.extract_strided_slice %8 {offsets = [0, 0], sizes = [1, 16], strides = [1, 1]} : vector<1x32xf32> to vector<1x16xf32>
    %60 = vector.extract_strided_slice %9 {offsets = [0, 0], sizes = [1, 16], strides = [1, 1]} : vector<1x32xf32> to vector<1x16xf32>
    %cst_11 = arith.constant dense<0.000000e+00> : vector<16x16xf32>
    %61 = tpu.matmul %56, %57, %cst_11 {dimension_numbers = #tpu.dot_dimension_numbers<[1], [1], [0], [0], [0, 0, 1, 0], [], []>} : vector<16x16xf32>, vector<16x16xf32>, vector<16x16xf32> -> vector<16x16xf32>
    %cst_12 = arith.constant 2.500000e-01 : f32
    %62 = vector.broadcast %cst_12 : f32 to vector<16x16xf32>
    %63 = arith.mulf %61, %62 : vector<16x16xf32>
    %64 = vector.extract_strided_slice %2 {offsets = [0, 0], sizes = [16, 16], strides = [1, 1]} : vector<16x17xf32> to vector<16x16xf32>
    %65 = arith.addf %63, %64 : vector<16x16xf32>
    %66 = vector.broadcast %59 : vector<1x16xf32> to vector<16x16xf32>
    %67 = arith.mulf %56, %66 : vector<16x16xf32>
    %cst_13 = arith.constant dense<0.000000e+00> : vector<16xf32>
    %68 = vector.multi_reduction <add>, %67, %cst_13 [1] : vector<16x16xf32> to vector<16xf32>
    %69 = vector.shape_cast %68 : vector<16xf32> to vector<16x1xf32>
    %cst_14 = arith.constant 2.500000e-01 : f32
    %70 = vector.broadcast %cst_14 : f32 to vector<16x1xf32>
    %71 = arith.mulf %69, %70 : vector<16x1xf32>
    %72 = vector.extract_strided_slice %2 {offsets = [0, 16], sizes = [16, 1], strides = [1, 1]} : vector<16x17xf32> to vector<16x1xf32>
    %73 = arith.addf %71, %72 : vector<16x1xf32>
    %cst_15 = arith.constant dense<0xFF800000> : vector<16xf32>
    %74 = vector.multi_reduction <maximumf>, %65, %cst_15 [1] : vector<16x16xf32> to vector<16xf32>
    %75 = vector.shape_cast %74 : vector<16xf32> to vector<16x1xf32>
    %76 = arith.maximumf %75, %73 : vector<16x1xf32>
    %77 = vector.broadcast %76 : vector<16x1xf32> to vector<16x16xf32>
    %78 = arith.subf %65, %77 : vector<16x16xf32>
    %79 = math.exp %78 : vector<16x16xf32>
    %80 = arith.subf %73, %76 : vector<16x1xf32>
    %81 = math.exp %80 : vector<16x1xf32>
    %cst_16 = arith.constant dense<0.000000e+00> : vector<16xf32>
    %82 = vector.multi_reduction <add>, %79, %cst_16 [1] : vector<16x16xf32> to vector<16xf32>
    %83 = vector.shape_cast %82 : vector<16xf32> to vector<16x1xf32>
    %84 = arith.addf %83, %81 : vector<16x1xf32>
    %85 = tpu.reciprocal %84 {approx = true} : vector<16x1xf32> -> vector<16x1xf32>
    %86 = vector.broadcast %85 : vector<16x1xf32> to vector<16x16xf32>
    %87 = arith.mulf %79, %86 : vector<16x16xf32>
    %cst_17 = arith.constant dense<0.000000e+00> : vector<16x16xf32>
    %88 = tpu.matmul %87, %58, %cst_17 {dimension_numbers = #tpu.dot_dimension_numbers<[1], [0], [0], [1], [0, 0, 1, 1], [], []>} : vector<16x16xf32>, vector<16x16xf32>, vector<16x16xf32> -> vector<16x16xf32>
    %89 = arith.mulf %81, %85 : vector<16x1xf32>
    %90 = vector.broadcast %89 : vector<16x1xf32> to vector<16x16xf32>
    %91 = vector.broadcast %60 : vector<1x16xf32> to vector<16x16xf32>
    %92 = arith.mulf %90, %91 : vector<16x16xf32>
    %93 = arith.addf %88, %92 : vector<16x16xf32>
    %94 = vector.extract_strided_slice %45 {offsets = [0, 16], sizes = [16, 16], strides = [1, 1]} : vector<16x32xf32> to vector<16x16xf32>
    %95 = vector.extract_strided_slice %48 {offsets = [0, 16], sizes = [16, 16], strides = [1, 1]} : vector<16x32xf32> to vector<16x16xf32>
    %96 = vector.extract_strided_slice %42 {offsets = [0, 16], sizes = [16, 16], strides = [1, 1]} : vector<16x32xf32> to vector<16x16xf32>
    %97 = vector.extract_strided_slice %8 {offsets = [0, 16], sizes = [1, 16], strides = [1, 1]} : vector<1x32xf32> to vector<1x16xf32>
    %98 = vector.extract_strided_slice %9 {offsets = [0, 16], sizes = [1, 16], strides = [1, 1]} : vector<1x32xf32> to vector<1x16xf32>
    %cst_18 = arith.constant dense<0.000000e+00> : vector<16x16xf32>
    %99 = tpu.matmul %94, %95, %cst_18 {dimension_numbers = #tpu.dot_dimension_numbers<[1], [1], [0], [0], [0, 0, 1, 0], [], []>} : vector<16x16xf32>, vector<16x16xf32>, vector<16x16xf32> -> vector<16x16xf32>
    %cst_19 = arith.constant 2.500000e-01 : f32
    %100 = vector.broadcast %cst_19 : f32 to vector<16x16xf32>
    %101 = arith.mulf %99, %100 : vector<16x16xf32>
    %102 = vector.extract_strided_slice %2 {offsets = [0, 0], sizes = [16, 16], strides = [1, 1]} : vector<16x17xf32> to vector<16x16xf32>
    %103 = arith.addf %101, %102 : vector<16x16xf32>
    %104 = vector.broadcast %97 : vector<1x16xf32> to vector<16x16xf32>
    %105 = arith.mulf %94, %104 : vector<16x16xf32>
    %cst_20 = arith.constant dense<0.000000e+00> : vector<16xf32>
    %106 = vector.multi_reduction <add>, %105, %cst_20 [1] : vector<16x16xf32> to vector<16xf32>
    %107 = vector.shape_cast %106 : vector<16xf32> to vector<16x1xf32>
    %cst_21 = arith.constant 2.500000e-01 : f32
    %108 = vector.broadcast %cst_21 : f32 to vector<16x1xf32>
    %109 = arith.mulf %107, %108 : vector<16x1xf32>
    %110 = vector.extract_strided_slice %2 {offsets = [0, 16], sizes = [16, 1], strides = [1, 1]} : vector<16x17xf32> to vector<16x1xf32>
    %111 = arith.addf %109, %110 : vector<16x1xf32>
    %cst_22 = arith.constant dense<0xFF800000> : vector<16xf32>
    %112 = vector.multi_reduction <maximumf>, %103, %cst_22 [1] : vector<16x16xf32> to vector<16xf32>
    %113 = vector.shape_cast %112 : vector<16xf32> to vector<16x1xf32>
    %114 = arith.maximumf %113, %111 : vector<16x1xf32>
    %115 = vector.broadcast %114 : vector<16x1xf32> to vector<16x16xf32>
    %116 = arith.subf %103, %115 : vector<16x16xf32>
    %117 = math.exp %116 : vector<16x16xf32>
    %118 = arith.subf %111, %114 : vector<16x1xf32>
    %119 = math.exp %118 : vector<16x1xf32>
    %cst_23 = arith.constant dense<0.000000e+00> : vector<16xf32>
    %120 = vector.multi_reduction <add>, %117, %cst_23 [1] : vector<16x16xf32> to vector<16xf32>
    %121 = vector.shape_cast %120 : vector<16xf32> to vector<16x1xf32>
    %122 = arith.addf %121, %119 : vector<16x1xf32>
    %123 = tpu.reciprocal %122 {approx = true} : vector<16x1xf32> -> vector<16x1xf32>
    %124 = vector.broadcast %123 : vector<16x1xf32> to vector<16x16xf32>
    %125 = arith.mulf %117, %124 : vector<16x16xf32>
    %cst_24 = arith.constant dense<0.000000e+00> : vector<16x16xf32>
    %126 = tpu.matmul %125, %96, %cst_24 {dimension_numbers = #tpu.dot_dimension_numbers<[1], [0], [0], [1], [0, 0, 1, 1], [], []>} : vector<16x16xf32>, vector<16x16xf32>, vector<16x16xf32> -> vector<16x16xf32>
    %127 = arith.mulf %119, %123 : vector<16x1xf32>
    %128 = vector.broadcast %127 : vector<16x1xf32> to vector<16x16xf32>
    %129 = vector.broadcast %98 : vector<1x16xf32> to vector<16x16xf32>
    %130 = arith.mulf %128, %129 : vector<16x16xf32>
    %131 = arith.addf %126, %130 : vector<16x16xf32>
    %132 = tpu.concatenate %93, %131, %55 in 1 : vector<16x16xf32>, vector<16x16xf32>, vector<16x64xf32> -> vector<16x96xf32>
    %cst_25 = arith.constant dense<0.000000e+00> : vector<16x32xf32>
    %133 = tpu.matmul %132, %4, %cst_25 {dimension_numbers = #tpu.dot_dimension_numbers<[1], [0], [0], [1], [0, 0, 1, 1], [], []>} : vector<16x96xf32>, vector<96x32xf32>, vector<16x32xf32> -> vector<16x32xf32>
    %134 = vector.broadcast %7 : vector<1x32xf32> to vector<16x32xf32>
    %135 = arith.mulf %134, %133 : vector<16x32xf32>
    %136 = arith.addf %1, %135 : vector<16x32xf32>
    %c0_26 = arith.constant 0 : index
    %c0_27 = arith.constant 0 : index
    %137 = vector.load %arg4[%c0_26, %c0_27] : memref<16x32xf32, #tpu.memory_space<vmem>>, vector<16x32xf32>
    tpu.vector_store %arg4[%c0_26, %c0_27], %136 {strides = array<i32>} : memref<16x32xf32, #tpu.memory_space<vmem>>, vector<16x32xf32>,
    return
  }
  func.func @transform_0(%arg0: i32) -> (i32, i32) {
    %c0_i32 = arith.constant 0 : i32
    %c0_i32_0 = arith.constant 0 : i32
    %c0_i32_1 = arith.constant 0 : i32
    return %c0_i32, %c0_i32_0 : i32, i32
  }
  func.func @transform_1(%arg0: i32) -> (i32, i32) {
    %c0_i32 = arith.constant 0 : i32
    %c0_i32_0 = arith.constant 0 : i32
    %c0_i32_1 = arith.constant 0 : i32
    return %c0_i32, %c0_i32_0 : i32, i32
  }
  func.func @transform_2(%arg0: i32) -> (i32, i32) {
    %c0_i32 = arith.constant 0 : i32
    %c0_i32_0 = arith.constant 0 : i32
    %c0_i32_1 = arith.constant 0 : i32
    return %c0_i32, %c0_i32_0 : i32, i32
  }
  func.func @transform_3(%arg0: i32) -> (i32, i32) {
    %c0_i32 = arith.constant 0 : i32
    %c0_i32_0 = arith.constant 0 : i32
    %c0_i32_1 = arith.constant 0 : i32
    return %c0_i32, %c0_i32_0 : i32, i32
  }
}

</mosaic_0001>

<bundles_post_ra>
// kernel: hlm_decoder_layer.1
= control target key start
LH: loop header
LB: loop body
LE: loop exit
PB: predicated region body
PF: predicated region fallthrough
CT: control target
= control target key end

     0   :  { %vm34_vm0 = vcmask 261120   ;;  %s1573_s0 = inlined_call_operand.vmem [shape: f32[16,64], index: 0, kind: input, shape index: {}]   ;;  %s1574_s1 = inlined_call_operand.vmem [shape: f32[32,288], index: 1, kind: input, shape index: {}]   ;;  %s1575_s2 = inlined_call_operand.vmem [shape: f32[136,32], index: 2, kind: input, shape index: {}]   ;;  %s1576_s3 = inlined_call_operand.hbm [shape: f32[16,32], index: 3, kind: output, shape index: {}]  }
   0x1   :  { %v1297_v0 = vld [vmem:[%s1573_s0] sm:$0xff]  ;;  %v1302_v1 = vld [vmem:[%s1573_s0 + $0x8] sm:$0xff] }
   0x2   :  { %8 = vsyncpa [#allocation3], 0  ;;  %v35_v2 = vsel %vm34_vm0, %v1297_v0, 0.0  ;;  %v38_v3 = vsel %vm34_vm0, %v1302_v1, 0.0  ;;  %v75_v14 = vld [vmem:[%s1574_s1 + $0x8] sm:$0xff]  ;;  %v78_v15 = vld [vmem:[%s1574_s1 + $0x20] sm:$0xff]  ;;  %v62_v36 = vlaneseq }
   0x3   :  { %36 = vadd.xlane.f32.xlu0 %v35_v2  ;;  %v74_v16 = vld [vmem:[%s1574_s1] sm:$0xff]  ;;  %v1115_v17 = vpack.c.bf16 %v78_v15, %v75_v14  ;;  %v77_v18 = vld [vmem:[%s1574_s1 + $0x18] sm:$0xff]  ;;  %v84_v20 = vld [vmem:[%s1574_s1 + $0x50] sm:$0xff]  ;;  %v1263_v21 = vmov 0.0   ;;  %s1264_s12 = smov 96   ;;  %s1265_s15 = smov 64  }
   0x4   :  { %v81_v19 = vld [vmem:[%s1574_s1 + $0x38] sm:$0xff]  ;;  %156 = vmatprep.mubr.f32.mxu1 %v1263_v21  ;;  %v1117_v22 = vpack.c.bf16 %v77_v18, %v74_v16  ;;  %v80_v24 = vld [vmem:[%s1574_s1 + $0x30] sm:$0xff]  ;;  %v83_v25 = vld [vmem:[%s1574_s1 + $0x48] sm:$0xff]  ;;  %v1364_v40 = vshrl.u32 %v62_v36, 7  ;;  %vm324_vm1 = vcmask 130048   ;;  %s1268_s23 = smov 112  }
   0x5   :  { %v1119_v23 = vpack.c.bf16 %v84_v20, %v81_v19  ;;  %1116 = vmatprep.subr.bf16.mxu1 %v1115_v17  ;;  %v1121_v26 = vpack.c.bf16 %v83_v25, %v80_v24  ;;  %v76_v27 = vld [vmem:[%s1574_s1 + $0x10] sm:$0xff]  ;;  %v79_v28 = vld [vmem:[%s1574_s1 + $0x28] sm:$0xff]  ;;  %v33_v30 = vld [vmem:[%s1575_s2 + $0x80] sm:$0xff]  ;;  %s1269_s24 = smov 48   ;;  %s1270_s21 = smov 16   ;;  %vm885_vm3 = vcmask 785408  }
   0x6   :  { %1118 = vmatpush1.bf16.msra.mxu1 %v1117_v22  ;;  %v1123_v29 = vpack.c.bf16 %v79_v28, %v76_v27  ;;  %v32_v31 = vld [vmem:[%s1575_s2 + $0x78] sm:$0xff]  ;;  %v1353_v32 = vld [vmem:[%s1575_s2 + $0x68] sm:$0xff]  ;;  %v1360_v33 = vld [vmem:[%s1575_s2 + $0x70] sm:$0xff]  ;;  %v64_v42 = vsub.s32 0, %v1364_v40  ;;  %v70_v44 = vsub.s32 1, %v1364_v40 }
   0x7   :  { %39 = vadd.xlane.f32.xlu0 %v38_v3  ;;  %1120 = vmatprep.subr.bf16.mxu1 %v1119_v23  ;;  %v1370_v43 = vld [vmem:[%s1575_s2 + $0x60] sm:$0xff]  ;;  %v85_v50 = vld [vmem:[%s1574_s1 + $0x58] sm:$0xff]  ;;  %vm1423_vm2 = vmpackc.low %vm324_vm1, %vm324_vm1 }
   0x8   :  { %v65_v45 = vrot.slane %v1370_v43, %v64_v42  ;;  %v71_v48 = vrot.slane %v1370_v43, %v70_v44  ;;  %v82_v49 = vld [vmem:[%s1574_s1 + $0x40] sm:$0xff]  ;;  %s1266_s1 = smov 32  }
   0x9   :  { %v1127_v55 = vpack.c.bf16 %v85_v50, %v82_v49  ;;  %v1267_v50 = vmov 48  }
   0xa   :  { %1122 = vmatpush1.bf16.msra.mxu1 %v1121_v26  ;;  %1191 = vset.pattern.permute.xlu1 %v1267_v50 }
   0xb   :  { %1124 = vmatprep.subr.bf16.mxu1 %v1123_v29  ;;  %1192 = vset.pattern.permute.xlu0 %v1267_v50 }
  0x1d   :  { %276 = vrot.lane.b32.xlu0 %v32_v31, %s1264_s12 }
  0x90   :  { %v37_v4 = vpop.xlane.xlu0 %36 }
  0x91   :  { %v42_v5 = vmul.f32 0.03125, %v37_v4 }
  0x93   :  { %v44_v6 = vsub.f32 %v1297_v0, %v42_v5 }
  0x94   :  { %v40_v7 = vpop.xlane.xlu0 %39 }
  0x95   :  { %v43_v8 = vmul.f32 0.03125, %v40_v7  ;;  %v46_v9 = vmul.f32 %v44_v6, %v44_v6 }
  0x97   :  { %v45_v10 = vsub.f32 %v1302_v1, %v43_v8  ;;  %v48_v11 = vsel %vm34_vm0, %v46_v9, 0.0 }
  0x98   :  { %49 = vadd.xlane.f32.xlu1 %v48_v11  ;;  %v277_v58 = vpop.permute.xlu0 %276 }
  0x99   :  { %v47_v12 = vmul.f32 %v45_v10, %v45_v10 }
  0x9b   :  { %v51_v13 = vsel %vm34_vm0, %v47_v12, 0.0 }
  0x9c   :  { %52 = vadd.xlane.f32.xlu1 %v51_v13 }
  0xad   :  { %278 = vrot.lane.b32.xlu1 %v33_v30, %s1264_s12 }
  0xb1   :  { %268 = vrot.lane.b32.xlu1 %v1353_v32, %s1265_s15 }
  0xb5   :  { %270 = vrot.lane.b32.xlu1 %v1360_v33, %s1265_s15 }
 0x125   :  { %v50_v34 = vpop.xlane.xlu1 %49 }
 0x126   :  { %v54_v35 = vmul.f32 0.03125, %v50_v34 }
 0x128   :  { %v56_v37 = vadd.f32 1e-05, %v54_v35 }
 0x129   :  { %v53_v38 = vpop.xlane.xlu1 %52 }
 0x12a   :  { %1203 = vrsqrt.f32 %v56_v37  ;;  %v55_v39 = vmul.f32 0.03125, %v53_v38 }
 0x12c   :  { %v57_v41 = vadd.f32 1e-05, %v55_v39 }
 0x12d   :  { %v279_v63 = vpop.permute.xlu1 %278 }
 0x12e   :  { %1205 = vrsqrt.f32 %v57_v41 }
 0x131   :  { %v269_v8 = vpop.permute.xlu1 %268 }
 0x134   :  { %v1204_v46 = vpop.eup %1203 }
 0x135   :  { %v60_v47 = vmul.f32 %v1204_v46, %v44_v6  ;;  %v271_v9 = vpop.permute.xlu1 %270 }
 0x137   :  { %v66_v51 = vmul.f32 %v65_v45, %v60_v47 }
 0x138   :  { %v1206_v52 = vpop.eup %1205 }
 0x139   :  { %v72_v53 = vadd.f32 %v71_v48, %v66_v51  ;;  %v61_v54 = vmul.f32 %v1206_v52, %v45_v10 }
 0x13b   :  { %993 = vmatmul.mubr.msk.f32.vlgmr.msra.gmra.mrb[0].mxu1 %vm34_vm0, %v72_v53  ;;  %v67_v56 = vmul.f32 %v65_v45, %v61_v54 }
 0x13c   :  { %1126 = vmatpush3.bf16.msra.mxu1 %v1123_v29  ;;  %162 = vmatprep.mubr.f32.mxu1 %v1263_v21  ;;  %v424_v21 = vsub.s32 3, %v1364_v40 }
 0x13d   :  { %v73_v57 = vadd.f32 %v71_v48, %v67_v56  ;;  %1128 = vmatprep.subr.bf16.mxu1 %v1127_v55 }
 0x13e   :  { %v425_v23 = vrot.slane %v1370_v43, %v424_v21 }
 0x13f   :  { %994 = vmatmul.mubr.msk.f32.gmra.mrb[2].mxu1 %vm34_vm0, %v73_v57 }
 0x140   :  { %1130 = vmatpush3.bf16.msra.mxu1 %v1127_v55  ;;  %1057 = vmatprep.mubr.msk.f32.mxu1 %vm34_vm0, %v72_v53 }
 0x143   :  { %1058 = vmatmul.mubr.msk.f32.vlgmr.msra.gmra.mrb[4].mxu1 %vm34_vm0, %v73_v57 }
 0x20e   :  { %v1385_v59 = vpop.f32.mrb[0].mxu1 }
 0x20f   :  { %v160_v60 = vpop.f32.mrb[1].mxu1 }
 0x210   :  { %v282_v61 = vmul.f32 %v277_v58, %v160_v60  ;;  %v274_v11 = vmul.f32 %v269_v8, %v160_v60  ;;  %v244_v22 = vmul.f32 %v160_v60, %v1353_v32 }
 0x212   :  { %v1387_v62 = vpop.f32.mrb[2].mxu1  ;;  %286 = vrot.lane.b32.xlu0 %v282_v61, %s1264_s12 }
 0x213   :  { %v166_v2 = vpop.f32.mrb[3].mxu1 }
 0x214   :  { %v283_v3 = vmul.f32 %v279_v63, %v166_v2  ;;  %v275_v12 = vmul.f32 %v271_v9, %v166_v2  ;;  %v245_v32 = vmul.f32 %v166_v2, %v1360_v33 }
 0x216   :  { %v1390_v4 = vpop.f32.mrb[4].mxu1  ;;  %288 = vrot.lane.b32.xlu1 %v283_v3, %s1264_s12  ;;  %248 = vrot.lane.b32.xlu0 %v32_v31, %s1266_s1 }
 0x217   :  { %v1394_v5 = vpop.f32.mrb[5].mxu1 }
 0x218   :  { %v1198_v6 = vpack.i.bf16 %v1390_v4, %v1394_v5  ;;  %v1137_v7 = vpack.c.bf16 %v1390_v4, %v1394_v5 }
 0x21a   :  { %1138 = vmatprep.subr.bf16.mxu1 %v1137_v7  ;;  %250 = vrot.lane.b32.xlu1 %v33_v30, %s1266_s1 }
 0x21b   :  { %1140 = vmatpush3.bf16.msra.mxu1 %v1137_v7 }
 0x284   :  { %v287_v10 = vpop.permute.xlu0 %286 }
 0x285   :  { %v292_v15 = vadd.f32 %v287_v10, %v274_v11 }
 0x288   :  { %v289_v13 = vpop.permute.xlu1 %288  ;;  %v249_v14 = vpop.permute.xlu0 %248 }
 0x289   :  { %v293_v16 = vadd.f32 %v289_v13, %v275_v12  ;;  %v254_v17 = vmul.f32 %v249_v14, %v160_v60 }
 0x28b   :  { %v1401_v18 = vpack.i.bf16 %v293_v16, %v292_v15  ;;  %258 = vrot.lane.b32.xlu1 %v254_v17, %s1264_s12 }
 0x28c   :  { %v251_v19 = vpop.permute.xlu1 %250 }
 0x28d   :  { %1187 = vrot.lane.b32.xlu0 %v1401_v18, %s1265_s15  ;;  %v255_v20 = vmul.f32 %v251_v19, %v166_v2 }
 0x28f   :  { %414 = vrot.lane.b32.xlu1 %v1297_v0, %s1264_s12 }
 0x291   :  { %260 = vrot.lane.b32.xlu0 %v255_v20, %s1264_s12 }
 0x295   :  { %416 = vrot.lane.b32.xlu0 %v1302_v1, %s1264_s12 }
 0x2fd   :  { %v259_v24 = vpop.permute.xlu1 %258 }
 0x2fe   :  { %v1414_v25 = vadd.f32 %v259_v24, %v244_v22 }
 0x2ff   :  { %v1188_v26 = vpop.permute.xlu0 %1187 }
 0x300   :  { %v1190_v27 = vunpack.i.h.bf16 %v1188_v26  ;;  %v1189_v28 = vunpack.i.l.bf16 %v1188_v26  ;;  %1064 = vmatprep.mubr.msk.f32.mxu0 %vm324_vm1, %v1414_v25  ;;  %v1419_v29 = vmul.f32 %v425_v23, %v1414_v25 }
 0x301   :  { %v1439_v44 = vpop.permute.xlu1 %414 }
 0x302   :  { %v428_v31 = vsel %vm324_vm1, %v1419_v29, 0.0  ;;  %v1131_v34 = vpack.c.bf16 %v1190_v27, %v1189_v28 }
 0x303   :  { %429 = vadd.xlane.f32.xlu1 %v428_v31  ;;  %v261_v35 = vpop.permute.xlu0 %260 }
 0x304   :  { %v265_v36 = vadd.f32 %v261_v35, %v245_v32  ;;  %1133 = vmatprep.subr.msk.bf16.mxu0 %vm1423_vm2, %v1131_v34 }
 0x305   :  { %1136 = vmatpush3.bf16.xpose.msk.msra.mxu0 %vm1423_vm2, %v1131_v34 }
 0x306   :  { %v1434_v37 = vmul.f32 %v425_v23, %v265_v36 }
 0x307   :  { %v1442_v46 = vpop.permute.xlu0 %416 }
 0x308   :  { %v431_v38 = vsel %vm324_vm1, %v1434_v37, 0.0 }
 0x309   :  { %432 = vadd.xlane.f32.xlu0 %v431_v38 }
 0x30c   :  { %1065 = vmatmul.mubr.msk.f32.vlgmr.msra.gmra.mrb[0].mxu0 %vm324_vm1, %v265_v36 }
 0x390   :  { %v430_v51 = vpop.xlane.xlu1 %429 }
 0x391   :  { %v434_v52 = vmul.f32 0.25, %v430_v51 }
 0x393   :  { %v436_v55 = vadd.f32 %v434_v52, %v1297_v0 }
 0x396   :  { %v433_v53 = vpop.xlane.xlu0 %432 }
 0x397   :  { %v435_v54 = vmul.f32 0.25, %v433_v53 }
 0x399   :  { %v437_v60 = vadd.f32 %v435_v54, %v1302_v1 }
 0x3df   :  { %v1066_v39 = vpop.f32.mrb[0].mxu0 }
 0x3e0   :  { %v401_v33 = vpop.f32.mrb[1].mxu0  ;;  %v411_v41 = vmul.f32 0.25, %v1066_v39 }
 0x3e1   :  { %v410_v42 = vmul.f32 0.25, %v401_v33 }
 0x3e2   :  { %v421_v48 = vadd.f32 %v1442_v46, %v411_v41 }
 0x3e3   :  { %v420_v45 = vadd.f32 %v1439_v44, %v410_v42 }
 0x3e4   :  { %v441_v49 = vsel %vm324_vm1, %v421_v48, -inf }
 0x3e5   :  { %v438_v47 = vsel %vm324_vm1, %v420_v45, -inf }
 0x3e6   :  { %439 = vmax.xlane.f32.xlu0 %v438_v47 }
 0x3ea   :  { %442 = vmax.xlane.f32.xlu0 %v441_v49 }
 0x473   :  { %v440_v56 = vpop.xlane.xlu0 %439 }
 0x474   :  { %v444_v57 = vmax.f32 %v440_v56, %v436_v55 }
 0x476   :  { %v462_v58 = vsub.f32 %v436_v55, %v444_v57  ;;  %448 = vperm.xlu1 %1191, %v444_v57  }
 0x477   :  { %v443_v61 = vpop.xlane.xlu0 %442 }
 0x478   :  { %v445_v63 = vmax.f32 %v443_v61, %v437_v60  ;;  %v464_v16 = vmul.f32 1.442695, %v462_v58 }
 0x47a   :  { %v463_v2 = vsub.f32 %v437_v60, %v445_v63  ;;  %453 = vperm.xlu0 %1192, %v445_v63  }
 0x47c   :  { %v466_v17 = vmul.f32 1.442695, %v463_v2 }
 0x4f5   :  { %v449_v3 = vpop.permute.xlu1 %448 }
 0x4f6   :  { %v456_v7 = vsub.f32 %v420_v45, %v449_v3 }
 0x4f8   :  { %v458_v8 = vmul.f32 1.442695, %v456_v7 }
 0x4f9   :  { %v454_v9 = vpop.permute.xlu0 %453 }
 0x4fa   :  { %1207 = vpow2.f32 %v458_v8  ;;  %v457_v10 = vsub.f32 %v421_v48, %v454_v9 }
 0x4fc   :  { %v460_v11 = vmul.f32 1.442695, %v457_v10 }
 0x4fe   :  { %1209 = vpow2.f32 %v460_v11 }
 0x4ff   :  { %1211 = vpow2.f32 %v464_v16 }
 0x500   :  { %1213 = vpow2.f32 %v466_v17 }
 0x504   :  { %v1208_v12 = vpop.eup %1207 }
 0x505   :  { %v468_v13 = vsel %vm324_vm1, %v1208_v12, 0.0 }
 0x506   :  { %469 = vadd.xlane.f32.xlu1 %v468_v13 }
 0x508   :  { %v1210_v14 = vpop.eup %1209 }
 0x509   :  { %v471_v15 = vsel %vm324_vm1, %v1210_v14, 0.0  ;;  %v1212_v19 = vpop.eup %1211 }
 0x50a   :  { %472 = vadd.xlane.f32.xlu0 %v471_v15  ;;  %v1214_v22 = vpop.eup %1213 }
 0x520   :  { %591 = vrot.lane.b32.xlu0 %v265_v36, %s1268_s23 }
 0x593   :  { %v470_v20 = vpop.xlane.xlu1 %469 }
 0x594   :  { %v474_v21 = vadd.f32 %v1212_v19, %v470_v20 }
 0x596   :  { %1215 = vrcp.f32 %v474_v21 }
 0x597   :  { %v473_v23 = vpop.xlane.xlu0 %472 }
 0x598   :  { %v475_v24 = vadd.f32 %v1214_v22, %v473_v23 }
 0x59a   :  { %1217 = vrcp.f32 %v475_v24 }
 0x5a0   :  { %v1216_v26 = vpop.eup %1215 }
 0x5a1   :  { %480 = vperm.xlu1 %1191, %v1216_v26   ;;  %v1452_v27 = vmul.f32 %v1216_v26, %v1212_v19 }
 0x5a4   :  { %v1218_v28 = vpop.eup %1217 }
 0x5a5   :  { %485 = vperm.xlu1 %1191, %v1218_v28   ;;  %v1454_v31 = vmul.f32 %v1218_v28, %v1214_v22 }
 0x5a9   :  { %1194 = vrot.lane.b32.xlu1 %v1401_v18, %s1269_s24 }
 0x5ad   :  { %589 = vrot.lane.b32.xlu1 %v1414_v25, %s1268_s23 }
 0x5b1   :  { %686 = vrot.lane.b32.xlu1 %v1419_v29, %s1268_s23 }
 0x5b5   :  { %688 = vrot.lane.b32.xlu1 %v1434_v37, %s1268_s23  ;;  %v592_v37 = vpop.permute.xlu0 %591 }
 0x620   :  { %v481_v32 = vpop.permute.xlu1 %480 }
 0x621   :  { %v488_v34 = vmul.f32 %v1208_v12, %v481_v32 }
 0x623   :  { %1071 = vmatprep.mubr.msk.f32.mxu1 %vm324_vm1, %v488_v34 }
 0x624   :  { %v486_v35 = vpop.permute.xlu1 %485 }
 0x625   :  { %v489_v36 = vmul.f32 %v1210_v14, %v486_v35 }
 0x627   :  { %1072 = vmatmul.mubr.msk.f32.vlgmr.msra.gmra.mrb[6].mxu1 %vm324_vm1, %v489_v36 }
 0x628   :  { %v1195_v38 = vpop.permute.xlu1 %1194 }
 0x629   :  { %v1197_v39 = vunpack.i.h.bf16 %v1195_v38  ;;  %v1196_v18 = vunpack.i.l.bf16 %v1195_v38 }
 0x62b   :  { %v1141_v33 = vpack.c.bf16 %v1197_v39, %v1196_v18  ;;  %v504_v39 = vsub.s32 4, %v1364_v40 }
 0x62c   :  { %v590_v41 = vpop.permute.xlu1 %589 }
 0x62d   :  { %1143 = vmatprep.subr.msk.bf16.mxu1 %vm1423_vm2, %v1141_v33  ;;  %1078 = vmatprep.mubr.msk.f32.mxu1 %vm324_vm1, %v590_v41  ;;  %v1496_v41 = vrot.slane %v1370_v43, %v504_v39 }
 0x62e   :  { %1146 = vmatpush3.bf16.xpose.msk.msra.mxu1 %vm1423_vm2, %v1141_v33 }
 0x630   :  { %v687_v25 = vpop.permute.xlu1 %686 }
 0x631   :  { %v692_v29 = vsel %vm324_vm1, %v687_v25, 0.0 }
 0x632   :  { %693 = vadd.xlane.f32.xlu1 %v692_v29 }
 0x634   :  { %v689_v42 = vpop.permute.xlu1 %688 }
 0x635   :  { %1079 = vmatmul.mubr.msk.f32.vlgmr.msra.gmra.mrb[8].mxu1 %vm324_vm1, %v592_v37  ;;  %v695_v45 = vsel %vm324_vm1, %v689_v42, 0.0 }
 0x636   :  { %696 = vadd.xlane.f32.xlu0 %v695_v45 }
 0x6bf   :  { %v694_v56 = vpop.xlane.xlu1 %693 }
 0x6c0   :  { %v698_v57 = vmul.f32 0.25, %v694_v56 }
 0x6c2   :  { %v700_v61 = vadd.f32 %v698_v57, %v1297_v0  ;;  %v23_v57 = vld [vmem:[%s1575_s2 + $0x30] sm:$0xff] }
 0x6c3   :  { %v697_v58 = vpop.xlane.xlu0 %696 }
 0x6c4   :  { %v699_v60 = vmul.f32 0.25, %v697_v58  ;;  %v24_v58 = vld [vmem:[%s1575_s2 + $0x38] sm:$0xff] }
 0x6fa   :  { %v1473_v47 = vpop.f32.mrb[6].mxu1 }
 0x6fb   :  { %v1475_v48 = vpop.f32.mrb[7].mxu1 }
 0x708   :  { %v1080_v49 = vpop.f32.mrb[8].mxu1 }
 0x709   :  { %v671_v50 = vpop.f32.mrb[9].mxu1  ;;  %v681_v51 = vmul.f32 0.25, %v1080_v49 }
 0x70a   :  { %v680_v30 = vmul.f32 0.25, %v671_v50  ;;  %v17_v50 = vld [vmem:[%s1575_s2] sm:$0xff] }
 0x70b   :  { %v683_v54 = vadd.f32 %v681_v51, %v1442_v46  ;;  %v18_v51 = vld [vmem:[%s1575_s2 + $0x8] sm:$0xff] }
 0x70c   :  { %v682_v52 = vadd.f32 %v680_v30, %v1439_v44  ;;  %v701_v44 = vadd.f32 %v699_v60, %v1302_v1  ;;  %v19_v30 = vld [vmem:[%s1575_s2 + $0x10] sm:$0xff]  ;;  %v1163_v60 = vpack.c.bf16 %v24_v58, %v23_v57 }
 0x70d   :  { %v705_v55 = vsel %vm324_vm1, %v683_v54, -inf }
 0x70e   :  { %v702_v53 = vsel %vm324_vm1, %v682_v52, -inf }
 0x70f   :  { %703 = vmax.xlane.f32.xlu1 %v702_v53  ;;  %v20_v53 = vld [vmem:[%s1575_s2 + $0x18] sm:$0xff] }
 0x713   :  { %706 = vmax.xlane.f32.xlu1 %v705_v55  ;;  %v22_v55 = vld [vmem:[%s1575_s2 + $0x28] sm:$0xff] }
 0x79c   :  { %v704_v63 = vpop.xlane.xlu1 %703 }
 0x79d   :  { %v708_v2 = vmax.f32 %v704_v63, %v700_v61  ;;  %v26_v63 = vld [vmem:[%s1575_s2 + $0x48] sm:$0xff] }
 0x79f   :  { %v726_v3 = vsub.f32 %v700_v61, %v708_v2  ;;  %712 = vperm.xlu0 %1192, %v708_v2   ;;  %v25_v61 = vld [vmem:[%s1575_s2 + $0x40] sm:$0xff] }
 0x7a0   :  { %v707_v7 = vpop.xlane.xlu1 %706  ;;  %v1167_v2 = vpack.c.bf16 %v26_v63, %v25_v61 }
 0x7a1   :  { %v709_v8 = vmax.f32 %v707_v7, %v701_v44  ;;  %v728_v20 = vmul.f32 1.442695, %v726_v3  ;;  %v998_v3 = vmul.f32 -1.442695, %v1387_v62 }
 0x7a3   :  { %v727_v9 = vsub.f32 %v701_v44, %v709_v8  ;;  %717 = vperm.xlu1 %1191, %v709_v8   ;;  %v997_v44 = vmul.f32 -1.442695, %v1385_v59 }
 0x7a5   :  { %v730_v21 = vmul.f32 1.442695, %v727_v9 }
 0x81e   :  { %v713_v46 = vpop.permute.xlu0 %712 }
 0x81f   :  { %v720_v10 = vsub.f32 %v682_v52, %v713_v46  ;;  %v1151_v52 = vpack.c.bf16 %v18_v51, %v17_v50 }
 0x821   :  { %v722_v11 = vmul.f32 1.442695, %v720_v10  ;;  %1152 = vmatprep.subr.bf16.mxu0 %v1151_v52  ;;  %v27_v10 = vld [vmem:[%s1575_s2 + $0x50] sm:$0xff] }
 0x822   :  { %v718_v12 = vpop.permute.xlu1 %717  ;;  %1154 = vmatpush3.bf16.msra.mxu0 %v1151_v52 }
 0x823   :  { %1219 = vpow2.f32 %v722_v11  ;;  %v721_v13 = vsub.f32 %v683_v54, %v718_v12  ;;  %v1155_v54 = vpack.c.bf16 %v20_v53, %v19_v30  ;;  %v28_v11 = vld [vmem:[%s1575_s2 + $0x58] sm:$0xff] }
 0x824   :  { %v1171_v12 = vpack.c.bf16 %v28_v11, %v27_v10 }
 0x825   :  { %v724_v14 = vmul.f32 1.442695, %v721_v13  ;;  %1156 = vmatprep.subr.bf16.mxu0 %v1155_v54 }
 0x826   :  { %1158 = vmatpush3.bf16.msra.mxu0 %v1155_v54 }
 0x827   :  { %1221 = vpow2.f32 %v724_v14 }
 0x828   :  { %1223 = vpow2.f32 %v728_v20 }
 0x829   :  { %1225 = vpow2.f32 %v730_v21 }
 0x82d   :  { %v1220_v15 = vpop.eup %1219 }
 0x82e   :  { %v732_v16 = vsel %vm324_vm1, %v1220_v15, 0.0 }
 0x82f   :  { %733 = vadd.xlane.f32.xlu1 %v732_v16 }
 0x831   :  { %v1222_v17 = vpop.eup %1221 }
 0x832   :  { %v735_v19 = vsel %vm324_vm1, %v1222_v17, 0.0  ;;  %v1224_v22 = vpop.eup %1223 }
 0x833   :  { %736 = vadd.xlane.f32.xlu0 %v735_v19  ;;  %v1226_v26 = vpop.eup %1225 }
 0x8bc   :  { %v734_v23 = vpop.xlane.xlu1 %733 }
 0x8bd   :  { %v738_v24 = vadd.f32 %v1224_v22, %v734_v23 }
 0x8bf   :  { %1227 = vrcp.f32 %v738_v24 }
 0x8c0   :  { %v737_v28 = vpop.xlane.xlu0 %736 }
 0x8c1   :  { %v739_v32 = vadd.f32 %v1226_v26, %v737_v28 }
 0x8c3   :  { %1229 = vrcp.f32 %v739_v32 }
 0x8c4   :  { %1231 = vpow2.f32 %v998_v3 }
 0x8c5   :  { %1233 = vpow2.f32 %v997_v44 }
 0x8c9   :  { %v1228_v34 = vpop.eup %1227 }
 0x8ca   :  { %744 = vperm.xlu0 %1192, %v1228_v34   ;;  %v754_v35 = vmul.f32 %v1228_v34, %v1224_v22 }
 0x8cd   :  { %v1230_v36 = vpop.eup %1229 }
 0x8ce   :  { %758 = vperm.xlu0 %1192, %v754_v35   ;;  %749 = vperm.xlu1 %1191, %v1230_v36   ;;  %v755_v38 = vmul.f32 %v1230_v36, %v1226_v26  ;;  %v1232_v7 = vpop.eup %1231 }
 0x8cf   :  { %v1234_v8 = vpop.eup %1233  ;;  %v301_v9 = vadd.f32 1.0, %v1232_v7 }
 0x8d0   :  { %v300_v46 = vadd.f32 1.0, %v1234_v8 }
 0x8d1   :  { %1235 = vrcp.f32 %v301_v9 }
 0x8d2   :  { %1199 = vrot.lane.b32.xlu1 %v1198_v6, %s1268_s23  ;;  %1237 = vrcp.f32 %v300_v46 }
 0x8d6   :  { %763 = vperm.xlu1 %1191, %v755_v38  }
 0x8da   :  { %310 = vrot.lane.b32.xlu1 %v1385_v59, %s1265_s15 }
 0x8de   :  { %312 = vrot.lane.b32.xlu1 %v1387_v62, %s1265_s15 }
 0x8e2   :  { %499 = vperm.xlu1 %1191, %v1454_v31  }
 0x949   :  { %v745_v18 = vpop.permute.xlu0 %744 }
 0x94a   :  { %v752_v33 = vmul.f32 %v1220_v15, %v745_v18  ;;  %v1236_v15 = vpop.eup %1235 }
 0x94b   :  { %v1238_v19 = vpop.eup %1237  ;;  %v307_v24 = vmul.f32 %v1236_v15, %v1387_v62 }
 0x94c   :  { %1085 = vmatprep.mubr.msk.f32.mxu1 %vm324_vm1, %v752_v33  ;;  %v306_v26 = vmul.f32 %v1238_v19, %v1385_v59 }
 0x94d   :  { %v759_v4 = vpop.permute.xlu0 %758  ;;  %v750_v5 = vpop.permute.xlu1 %749 }
 0x94e   :  { %v766_v6 = vmul.f32 %v759_v4, %v1496_v41  ;;  %v753_v49 = vmul.f32 %v1222_v17, %v750_v5 }
 0x950   :  { %778 = vrot.lane.b32.xlu0 %v766_v6, %s1268_s23 }
 0x951   :  { %v1200_v25 = vpop.permute.xlu1 %1199 }
 0x952   :  { %v1202_v29 = vunpack.i.h.bf16 %v1200_v25  ;;  %v1201_v37 = vunpack.i.l.bf16 %v1200_v25 }
 0x954   :  { %v1147_v42 = vpack.c.bf16 %v1202_v29, %v1201_v37 }
 0x955   :  { %v764_v31 = vpop.permute.xlu1 %763 }
 0x956   :  { %v767_v45 = vmul.f32 %v764_v31, %v1496_v41  ;;  %1148 = vmatprep.subr.bf16.mxu1 %v1147_v42 }
 0x957   :  { %1150 = vmatpush3.bf16.msra.mxu1 %v1147_v42 }
 0x958   :  { %780 = vrot.lane.b32.xlu0 %v767_v45, %s1268_s23 }
 0x959   :  { %v311_v13 = vpop.permute.xlu1 %310 }
 0x95a   :  { %1086 = vmatmul.mubr.msk.f32.vlgmr.msra.gmra.mrb[10].mxu1 %vm324_vm1, %v753_v49  ;;  %v316_v32 = vmul.f32 %v311_v13, %v306_v26 }
 0x95c   :  { %494 = vperm.xlu0 %1192, %v1452_v27   ;;  %v21_v27 = vld [vmem:[%s1575_s2 + $0x20] sm:$0xff]  ;;  %s1271_s2 = smov [#allocation2]  }
 0x95d   :  { %v1159_v56 = vpack.c.bf16 %v22_v55, %v21_v27  ;;  %v313_v22 = vpop.permute.xlu1 %312  ;;  %s982_s22 = sshll.u32 %s1271_s2, 4  ;;  %s983_s22 = int_to_ptr.vmem [resolvable:$true] %s982_s22 }
 0x95e   :  { %v317_v28 = vmul.f32 %v313_v22, %v307_v24  ;;  %p1244_p1 = scmp.lt.s32.totalorder %s983_s22, %s983_s22 }
 0x95f   :  { %1160 = vmatprep.subr.bf16.mxu0 %v1159_v56 }
 0x960   :  { %1162 = vmatpush3.bf16.msra.mxu0 %v1159_v56 }
 0x961   :  { %1164 = vmatprep.subr.bf16.mxu0 %v1163_v60  ;;  %v500_v34 = vpop.permute.xlu1 %499 }
 0x962   :  { %v507_v38 = vmul.f32 %v1496_v41, %v500_v34 }
 0x964   :  { %1166 = vmatpush3.bf16.msra.mxu0 %v1163_v60  ;;  %v586_v33 = vadd.f32 %v1473_v47, %v507_v38 }
 0x965   :  { %1168 = vmatprep.subr.bf16.mxu0 %v1167_v2 }
 0x968   :  { %1170 = vmatpush3.bf16.msra.mxu0 %v1167_v2 }
 0x969   :  { %1172 = vmatprep.subr.bf16.mxu0 %v1171_v12 }
 0x96c   :  { %1174 = vmatpush3.bf16.msra.mxu0 %v1171_v12 }
 0x9c2   :  { %v779_v14 = vpop.permute.xlu0 %778 }
 0x9ca   :  { %v781_v16 = vpop.permute.xlu0 %780 }
 0x9db   :  { %v495_v35 = vpop.permute.xlu0 %494 }
 0x9dc   :  { %v506_v36 = vmul.f32 %v1496_v41, %v495_v35  ;;  %v969_v41 = vsub.s32 2, %v1364_v40 }
 0x9de   :  { %v581_v62 = vadd.f32 %v1475_v48, %v506_v36  ;;  %v970_v37 = vrot.slane %v1370_v43, %v969_v41 }
 0xa2d   :  { %v1087_v17 = vpop.f32.mrb[10].mxu1 }
 0xa2e   :  { %v862_v20 = vadd.f32 %v1087_v17, %v781_v16  ;;  %v856_v21 = vpop.f32.mrb[11].mxu1 }
 0xa2f   :  { %v857_v23 = vadd.f32 %v856_v21, %v779_v14 }
 0xa30   :  { %869 = vrot.lane.b32.xlu1 %v862_v20, %s1270_s21 }
 0xa31   :  { %867 = vrot.lane.b32.xlu0 %v857_v23, %s1270_s21 }
 0xa34   :  { %877 = vrot.lane.b32.xlu1 %v317_v28, %s1266_s1 }
 0xa35   :  { %875 = vrot.lane.b32.xlu0 %v316_v32, %s1266_s1  ;;  %s1239_s1 = scalar_lea.vmem %s983_s22, 256 }
 0xa36   :  { %p1240_p0 = scmp.ne.s32.totalorder %s983_s22, %s1239_s1  ;;  %p1245_p2 = scmp.lt.s32.totalorder %s1239_s1, %s1239_s1 }
 0xa38   :  { %p1246_p3 = por %p1245_p2, %p1244_p1 }
 0xa3a   :  { %p1247_p4 = pnand %p1246_p3, %p1240_p0 }
 0xaa2   :  { %v870_v39 = vpop.permute.xlu1 %869 }
 0xaa3   :  { %v868_v18 = vpop.permute.xlu0 %867  ;;  %v882_v6 = vsel %vm324_vm1, %v586_v33, %v870_v39 }
 0xaa4   :  { %v881_v4 = vsel %vm324_vm1, %v581_v62, %v868_v18 }
 0xaa6   :  { %v878_v59 = vpop.permute.xlu1 %877 }
 0xaa7   :  { %v876_v5 = vpop.permute.xlu0 %875  ;;  %v884_v29 = vsel %vm34_vm0, %v882_v6, %v878_v59 }
 0xaa8   :  { %v883_v25 = vsel %vm34_vm0, %v881_v4, %v876_v5 }
 0xaa9   :  { %1112 = vmatprep.mubr.msk.f32.mxu0 %vm885_vm3, %v883_v25 }
 0xaaa   :  { %1113 = vmatmul.mubr.msk.f32.vlgmr.msra.gmra.mrb[2].mxu0 %vm885_vm3, %v884_v29 }
 0xb7d   :  { %v1114_v48 = vpop.f32.mrb[2].mxu0 }
 0xb7e   :  { %v972_v47 = vmul.f32 %v1114_v48, %v970_v37  ;;  %v958_v42 = vpop.f32.mrb[3].mxu0 }
 0xb7f   :  { %v971_v31 = vmul.f32 %v970_v37, %v958_v42 }
 0xb80   :  { %v974_v45 = vadd.f32 %v972_v47, %v1302_v1 }
 0xb81   :  { %v973_v49 = vadd.f32 %v971_v31, %v1297_v0 }
 0xb82   :  { %976 = vst.msk [vmem:[#allocation2 + $0x8] sm:$0xff] %vm34_vm0, %v974_v45 }
 0xb83   :  { %975 = vst.msk [vmem:[#allocation2] sm:$0xff] %vm34_vm0, %v973_v49 }
 0xb84   :  { %1250 = shalt.err (!%p1247_p4)
}
 0xb85   :  { %s1251_s25 = scalar_lea.hbm %s1576_s3, 256 }
 0xb86   :  { %p1252_p5 = scmp.ne.s32.totalorder %s1576_s3, %s1251_s25  ;;  %p1255_p6 = scmp.lt.u32.totalorder %s1251_s25, %s1576_s3 }
 0xb88   :  { %p1257_p7 = pnand %p1255_p6, %p1252_p5 }
 0xb8a   :  { %1260 = shalt.err (!%p1257_p7)
}
 0xb8b   :  { %s1272_s30 = smov 128   ;;  %s1273_s4 = smov 8  }
 0xb8c   :  { %988 = dma.vmem_to_hbm [thread:$0]  %s983_s22, 256, %s1576_s3, [#allocation3], %s1272_s30, %s1272_s30, %s1273_s4  }
 0xb8d   :  { %1261 = dma.done.wait [#allocation3], 256  }
 0xb8e   :  { %1262 = vsyncadd [#allocation3], 4294967040 }
 0xb8f   :  { %992 = vsyncpa [#allocation3], 1 }

</bundles_post_ra>
